<compile_context>
chip_gen: v7x
topology: tpu7x:2x2x1
jax: 0.10.0
libtpu: 0.0.40
codegen_flags: <defaults>
</compile_context>

<pallas_src>
import jax
import jax.numpy as jnp
from jax.experimental import pallas as pl
from jax.experimental.pallas import tpu as pltpu


# -----------------------------------------------------------------------------
# Fused kernel: Conv2d(3x3, pad=1)+ReLU  ->  ConvTranspose2d(4, s=2, p=1)+ReLU
# -----------------------------------------------------------------------------
def _decoder_block_kernel(x_ref, t1_ref, b1_ref, t2_ref, b2_ref, o_ref,
                          xp_ref, yp_ref):
    """One batch element (grid step).

    x_ref : (H, W*Cin)            NHWC row slab of the input (channels fastest)
    t1_ref: (3, W*Cin, W*Cmid)    block-Toeplitz conv1 weights, one per kernel row dy
    b1_ref: (1, W*Cmid)           conv1 bias tiled along the row
    t2_ref: (4, W*Cmid, 2W*Cout)  block-Toeplitz sub-pixel deconv weights,
                                  ordered (py,ti) = (0,0),(0,1),(1,0),(1,1)
    b2_ref: (1, 2W*Cout)          deconv bias tiled along the row
    o_ref : (2, H, 2W*Cout)       parity-major output: [py, m, (2n+px)*Cout+co]
    xp_ref: (H+2, W*Cin)   VMEM   row-padded input scratch
    yp_ref: (H+2, W*Cmid)  VMEM   row-padded intermediate scratch (stays on chip)
    """
    H = x_ref.shape[0]
    wcin = x_ref.shape[1]
    wcmid = yp_ref.shape[1]
    f32 = jnp.float32

    # ---- stage 1: 3x3 conv (pad=1) + bias + ReLU ----------------------------
    # Vertical zero padding = two border rows of the scratch; horizontal
    # padding is already folded into the Toeplitz weights.
    xp_ref[0:1, :] = jnp.zeros((1, wcin), f32)
    xp_ref[H + 1:H + 2, :] = jnp.zeros((1, wcin), f32)
    xp_ref[1:H + 1, :] = x_ref[...].astype(f32)

    acc = jnp.dot(xp_ref[0:H, :], t1_ref[0], preferred_element_type=f32)
    acc = acc + jnp.dot(xp_ref[1:H + 1, :], t1_ref[1], preferred_element_type=f32)
    acc = acc + jnp.dot(xp_ref[2:H + 2, :], t1_ref[2], preferred_element_type=f32)
    y = jnp.maximum(acc + b1_ref[...], 0.0)                  # (H, W*Cmid), f32

    # Intermediate never leaves VMEM (fusion).
    yp_ref[0:1, :] = jnp.zeros((1, wcmid), f32)
    yp_ref[H + 1:H + 2, :] = jnp.zeros((1, wcmid), f32)
    yp_ref[1:H + 1, :] = y

    # ---- stage 2: ConvTranspose2d(4, stride 2, pad 1) + bias + ReLU ---------
    # Sub-pixel decomposition: output row parity py in {0,1} is a 2-row-tap
    # conv over y; column taps / column parity are folded into the Toeplitz
    # weights.  The un-shifted (middle) row band is read from the register y,
    # the shifted bands from the row-padded scratch.
    b2 = b2_ref[...]
    z0 = jnp.dot(yp_ref[0:H, :], t2_ref[0], preferred_element_type=f32)
    z0 = z0 + jnp.dot(y, t2_ref[1], preferred_element_type=f32)
    z1 = jnp.dot(y, t2_ref[2], preferred_element_type=f32)
    z1 = z1 + jnp.dot(yp_ref[2:H + 2, :], t2_ref[3], preferred_element_type=f32)

    o_ref[0] = jnp.maximum(z0 + b2, 0.0).astype(o_ref.dtype)   # output rows 2m
    o_ref[1] = jnp.maximum(z1 + b2, 0.0).astype(o_ref.dtype)   # output rows 2m+1


# -----------------------------------------------------------------------------
# Weight preprocessing (runs once): PyTorch layouts -> block-Toeplitz matrices.
# -----------------------------------------------------------------------------
def _make_conv1_toeplitz(w1, W):
    """w1: Conv2d weight (Cmid, Cin, 3, 3)  ->  (3, W*Cin, W*Cmid).

    T1[dy][j*Cin+ci, n*Cmid+co] = w1[co, ci, dy, dx] with dx = j - n + 1 (pad=1),
    zero outside dx in [0,3).
    """
    cmid, cin = w1.shape[0], w1.shape[1]
    j = jnp.arange(W)[:, None]          # input column
    n = jnp.arange(W)[None, :]          # output column
    dx = j - n + 1
    valid = (dx >= 0) & (dx < 3)
    dxc = jnp.clip(dx, 0, 2)

    def per_dy(dy):
        wk = w1[:, :, dy, :]                               # (co, ci, dx)
        blk = jnp.where(valid[None, None], wk[:, :, dxc], 0.0)   # (co, ci, j, n)
        blk = jnp.transpose(blk, (2, 1, 3, 0))             # (j, ci, n, co)
        return blk.reshape(W * cin, W * cmid)

    return jnp.stack([per_dy(dy) for dy in range(3)], axis=0)


def _make_deconv_toeplitz(wt, W):
    """wt: ConvTranspose2d weight (Cmid, Cout, 4, 4) -> (4, W*Cmid, 2W*Cout).

    Sub-pixel form: output z[2m+py, 2n+px, co] accumulates, for row tap ti,
      y[m+py+ti-1, :] @ T2[py, ti]
    with
      T2[py,ti][j*Cmid+ci, (2n+px)*Cout+co] = wt[ci, co, 3-(2ti+py), 3-(2tj+px)],
      tj = j - n - px + 1 in {0,1}, zero otherwise (this also realises the
      horizontal zero padding).  Order of the leading axis: (0,0),(0,1),(1,0),(1,1).
    """
    cmid, cout = wt.shape[0], wt.shape[1]
    j = jnp.arange(W)[:, None, None]     # input column
    n = jnp.arange(W)[None, :, None]     # output column (pre-parity)
    px = jnp.arange(2)[None, None, :]    # column parity
    tj = j - n - px + 1                  # (W, W, 2)
    valid = (tj >= 0) & (tj <= 1)
    tjc = jnp.clip(tj, 0, 1)
    kc = 3 - (2 * tjc + px)              # kernel column index, (W, W, 2)

    mats = []
    for py in range(2):
        for ti in range(2):
            kr = 3 - (2 * ti + py)                         # kernel row index
            wk = wt[:, :, kr, :]                           # (ci, co, kw)
            blk = jnp.where(valid[None, None], wk[:, :, kc], 0.0)  # (ci,co,j,n,px)
            blk = jnp.transpose(blk, (2, 0, 3, 4, 1))      # (j, ci, n, px, co)
            mats.append(blk.reshape(W * cmid, 2 * W * cout))
    return jnp.stack(mats, axis=0)


def prepare_params(torch_params, W):
    """Convert PyTorch-layout weights to the kernel's form (done once)."""
    w1 = torch_params["w1"].astype(jnp.float32)    # (Cmid, Cin, 3, 3)
    b1 = torch_params["b1"].astype(jnp.float32)    # (Cmid,)
    wt = torch_params["wt"].astype(jnp.float32)    # (Cmid, Cout, 4, 4)
    b2 = torch_params["b2"].astype(jnp.float32)    # (Cout,)
    cmid, cout = wt.shape[0], wt.shape[1]
    return {
        "t1": _make_conv1_toeplitz(w1, W),                     # (3, W*Cin, W*Cmid)
        "b1": jnp.tile(b1, W).reshape(1, W * cmid),            # (1, W*Cmid)
        "t2": _make_deconv_toeplitz(wt, W),                    # (4, W*Cmid, 2W*Cout)
        "b2": jnp.tile(b2, 2 * W).reshape(1, 2 * W * cout),    # (1, 2W*Cout)
    }


# -----------------------------------------------------------------------------
# Forward wrapper: NCHW in -> NCHW out (single fused pallas_call).
# -----------------------------------------------------------------------------
def decoder_block_resnet(x_nchw, prep):
    N, Cin, H, W = x_nchw.shape
    t1, b1, t2, b2 = prep["t1"], prep["b1"], prep["t2"], prep["b2"]
    cmid = t1.shape[2] // W
    cout = b2.shape[1] // (2 * W)

    # NCHW -> (N, H, W*Cin) row slabs (layout plumbing only; no padding here).
    x2d = jnp.transpose(x_nchw, (0, 2, 3, 1)).reshape(N, H, W * Cin)

    out = pl.pallas_call(
        _decoder_block_kernel,
        out_shape=jax.ShapeDtypeStruct((N, 2, H, 2 * W * cout), x_nchw.dtype),
        grid=(N,),
        in_specs=[
            pl.BlockSpec((None, H, W * Cin), lambda n: (n, 0, 0)),
            pl.BlockSpec((3, W * Cin, W * cmid), lambda n: (0, 0, 0)),
            pl.BlockSpec((1, W * cmid), lambda n: (0, 0)),
            pl.BlockSpec((4, W * cmid, 2 * W * cout), lambda n: (0, 0, 0)),
            pl.BlockSpec((1, 2 * W * cout), lambda n: (0, 0)),
        ],
        out_specs=pl.BlockSpec((None, 2, H, 2 * W * cout), lambda n: (n, 0, 0, 0)),
        scratch_shapes=[
            pltpu.VMEM((H + 2, W * Cin), jnp.float32),    # row-padded x
            pltpu.VMEM((H + 2, W * cmid), jnp.float32),   # row-padded intermediate
        ],
        compiler_params=pltpu.CompilerParams(
            dimension_semantics=("parallel",)),
    )(x2d, t1, b1, t2, b2)

    # (N, 2, H, 2W*Cout) parity-major slab -> NCHW (N, Cout, 2H, 2W).
    out = out.reshape(N, 2, H, 2 * W, cout)
    out = jnp.transpose(out, (0, 4, 2, 1, 3)).reshape(N, cout, 2 * H, 2 * W)
    return out


# -----------------------------------------------------------------------------
# Test scaffolding: PyTorch-shaped params, pure-lax reference, self-check.
# -----------------------------------------------------------------------------
def make_params(key, cin, cmid, cout):
    k1, k2, k3, k4 = jax.random.split(key, 4)
    return {
        "w1": jax.random.normal(k1, (cmid, cin, 3, 3), jnp.float32) * 0.1,
        "b1": jax.random.normal(k2, (cmid,), jnp.float32) * 0.1,
        "wt": jax.random.normal(k3, (cmid, cout, 4, 4), jnp.float32) * 0.1,
        "b2": jax.random.normal(k4, (cout,), jnp.float32) * 0.1,
    }


def reference(x_nchw, torch_params):
    """Pure-JAX reference matching the PyTorch forward (lax convs)."""
    w1, b1 = torch_params["w1"], torch_params["b1"]
    wt, b2 = torch_params["wt"], torch_params["b2"]
    dn = ("NCHW", "OIHW", "NCHW")
    y = jax.lax.conv_general_dilated(
        x_nchw, w1, window_strides=(1, 1), padding=((1, 1), (1, 1)),
        dimension_numbers=dn)
    y = jax.nn.relu(y + b1[None, :, None, None])
    # ConvTranspose2d(k=4, s=2, p=1) == conv over the stride-2 dilated input
    # with padding K-1-p=2 and the flipped, in/out-swapped kernel.
    wt_conv = jnp.transpose(wt[:, :, ::-1, ::-1], (1, 0, 2, 3))
    z = jax.lax.conv_general_dilated(
        y, wt_conv, window_strides=(1, 1), padding=((2, 2), (2, 2)),
        lhs_dilation=(2, 2), dimension_numbers=dn)
    z = jax.nn.relu(z + b2[None, :, None, None])
    return z


if __name__ == "__main__":
    N, Cin, Cmid, Cout, H, W = 2, 4, 8, 4, 16, 16
    key = jax.random.PRNGKey(0)
    kx, kp = jax.random.split(key)
    x = jax.random.normal(kx, (N, Cin, H, W), jnp.float32)
    tparams = make_params(kp, Cin, Cmid, Cout)

    prep = prepare_params(tparams, W)
    fwd = jax.jit(decoder_block_resnet)
    out = jax.block_until_ready(fwd(x, prep))
    assert out.shape == (N, Cout, 2 * H, 2 * W), out.shape

    ref = jax.block_until_ready(reference(x, tparams))
    max_err = float(jnp.max(jnp.abs(out - ref)))
    assert jnp.allclose(out, ref, atol=1e-4, rtol=1e-4), max_err

    print("KERNEL_OK")
</pallas_src>

<mosaic_0001>
module attributes {stable_mosaic.version = 11 : i64} {
  func.func @_decoder_block_kernel(%arg0: i32, %arg1: memref<1x16x64xf32, #tpu.memory_space<vmem>>, %arg2: memref<3x64x128xf32, #tpu.memory_space<vmem>>, %arg3: memref<1x128xf32, #tpu.memory_space<vmem>>, %arg4: memref<4x128x128xf32, #tpu.memory_space<vmem>>, %arg5: memref<1x128xf32, #tpu.memory_space<vmem>>, %arg6: memref<1x2x16x128xf32, #tpu.memory_space<vmem>>, %arg7: memref<18x64xf32, #tpu.memory_space<vmem>>, %arg8: memref<18x128xf32, #tpu.memory_space<vmem>>) attributes {dimension_semantics = [#tpu.dimension_semantics<parallel>], iteration_bounds = array<i64: 2>, scalar_prefetch = 0 : i64, scratch_operands = 2 : i64, tpu.core_type = #tpu.core_type<tc>, window_params = [{transform_indices = @transform_0, window_bounds = array<i64: 1, 16, 64>}, {pipeline_mode = #tpu.pipeline_mode<synchronous>, transform_indices = @transform_1, window_bounds = array<i64: 3, 64, 128>}, {pipeline_mode = #tpu.pipeline_mode<synchronous>, transform_indices = @transform_2, window_bounds = array<i64: 1, 128>}, {pipeline_mode = #tpu.pipeline_mode<synchronous>, transform_indices = @transform_3, window_bounds = array<i64: 4, 128, 128>}, {pipeline_mode = #tpu.pipeline_mode<synchronous>, transform_indices = @transform_4, window_bounds = array<i64: 1, 128>}, {transform_indices = @transform_5, window_bounds = array<i64: 1, 2, 16, 128>}]} {
    %cst = arith.constant 0.000000e+00 : f32
    %0 = vector.broadcast %cst : f32 to vector<1x64xf32>
    %c0 = arith.constant 0 : index
    %c0_0 = arith.constant 0 : index
    %1 = vector.load %arg7[%c0, %c0_0] : memref<18x64xf32, #tpu.memory_space<vmem>>, vector<1x64xf32>
    tpu.vector_store %arg7[%c0, %c0_0], %0 {strides = array<i32>} : memref<18x64xf32, #tpu.memory_space<vmem>>, vector<1x64xf32>,
    %cst_1 = arith.constant 0.000000e+00 : f32
    %2 = vector.broadcast %cst_1 : f32 to vector<1x64xf32>
    %c17 = arith.constant 17 : index
    %c0_2 = arith.constant 0 : index
    %3 = vector.load %arg7[%c17, %c0_2] : memref<18x64xf32, #tpu.memory_space<vmem>>, vector<1x64xf32>
    tpu.vector_store %arg7[%c17, %c0_2], %2 {strides = array<i32>} : memref<18x64xf32, #tpu.memory_space<vmem>>, vector<1x64xf32>,
    %c0_3 = arith.constant 0 : index
    %c0_4 = arith.constant 0 : index
    %c0_5 = arith.constant 0 : index
    %4 = vector.load %arg1[%c0_3, %c0_4, %c0_5] : memref<1x16x64xf32, #tpu.memory_space<vmem>>, vector<1x16x64xf32>
    %5 = vector.shape_cast %4 : vector<1x16x64xf32> to vector<16x64xf32>
    %c1 = arith.constant 1 : index
    %c0_6 = arith.constant 0 : index
    %6 = vector.load %arg7[%c1, %c0_6] : memref<18x64xf32, #tpu.memory_space<vmem>>, vector<16x64xf32>
    tpu.vector_store %arg7[%c1, %c0_6], %5 {strides = array<i32>} : memref<18x64xf32, #tpu.memory_space<vmem>>, vector<16x64xf32>,
    %c0_7 = arith.constant 0 : index
    %c0_8 = arith.constant 0 : index
    %7 = vector.load %arg7[%c0_7, %c0_8] : memref<18x64xf32, #tpu.memory_space<vmem>>, vector<16x64xf32>
    %c0_9 = arith.constant 0 : index
    %c0_10 = arith.constant 0 : index
    %c0_11 = arith.constant 0 : index
    %8 = vector.load %arg2[%c0_9, %c0_10, %c0_11] : memref<3x64x128xf32, #tpu.memory_space<vmem>>, vector<1x64x128xf32>
    %9 = vector.shape_cast %8 : vector<1x64x128xf32> to vector<64x128xf32>
    %cst_12 = arith.constant dense<0.000000e+00> : vector<16x128xf32>
    %10 = tpu.matmul %7, %9, %cst_12 {dimension_numbers = #tpu.dot_dimension_numbers<[1], [0], [0], [1], [0, 0, 1, 1], [], []>} : vector<16x64xf32>, vector<64x128xf32>, vector<16x128xf32> -> vector<16x128xf32>
    %c1_13 = arith.constant 1 : index
    %c0_14 = arith.constant 0 : index
    %11 = vector.load %arg7[%c1_13, %c0_14] : memref<18x64xf32, #tpu.memory_space<vmem>>, vector<16x64xf32>
    %c1_15 = arith.constant 1 : index
    %c0_16 = arith.constant 0 : index
    %c0_17 = arith.constant 0 : index
    %12 = vector.load %arg2[%c1_15, %c0_16, %c0_17] : memref<3x64x128xf32, #tpu.memory_space<vmem>>, vector<1x64x128xf32>
    %13 = vector.shape_cast %12 : vector<1x64x128xf32> to vector<64x128xf32>
    %cst_18 = arith.constant dense<0.000000e+00> : vector<16x128xf32>
    %14 = tpu.matmul %11, %13, %cst_18 {dimension_numbers = #tpu.dot_dimension_numbers<[1], [0], [0], [1], [0, 0, 1, 1], [], []>} : vector<16x64xf32>, vector<64x128xf32>, vector<16x128xf32> -> vector<16x128xf32>
    %15 = arith.addf %10, %14 : vector<16x128xf32>
    %c2 = arith.constant 2 : index
    %c0_19 = arith.constant 0 : index
    %16 = vector.load %arg7[%c2, %c0_19] : memref<18x64xf32, #tpu.memory_space<vmem>>, vector<16x64xf32>
    %c2_20 = arith.constant 2 : index
    %c0_21 = arith.constant 0 : index
    %c0_22 = arith.constant 0 : index
    %17 = vector.load %arg2[%c2_20, %c0_21, %c0_22] : memref<3x64x128xf32, #tpu.memory_space<vmem>>, vector<1x64x128xf32>
    %18 = vector.shape_cast %17 : vector<1x64x128xf32> to vector<64x128xf32>
    %cst_23 = arith.constant dense<0.000000e+00> : vector<16x128xf32>
    %19 = tpu.matmul %16, %18, %cst_23 {dimension_numbers = #tpu.dot_dimension_numbers<[1], [0], [0], [1], [0, 0, 1, 1], [], []>} : vector<16x64xf32>, vector<64x128xf32>, vector<16x128xf32> -> vector<16x128xf32>
    %20 = arith.addf %15, %19 : vector<16x128xf32>
    %c0_24 = arith.constant 0 : index
    %c0_25 = arith.constant 0 : index
    %21 = vector.load %arg3[%c0_24, %c0_25] : memref<1x128xf32, #tpu.memory_space<vmem>>, vector<1x128xf32>
    %22 = vector.broadcast %21 : vector<1x128xf32> to vector<16x128xf32>
    %23 = arith.addf %20, %22 : vector<16x128xf32>
    %cst_26 = arith.constant 0.000000e+00 : f32
    %24 = vector.broadcast %cst_26 : f32 to vector<16x128xf32>
    %25 = arith.maximumf %23, %24 : vector<16x128xf32>
    %cst_27 = arith.constant 0.000000e+00 : f32
    %26 = vector.broadcast %cst_27 : f32 to vector<1x128xf32>
    %c0_28 = arith.constant 0 : index
    %c0_29 = arith.constant 0 : index
    %27 = vector.load %arg8[%c0_28, %c0_29] : memref<18x128xf32, #tpu.memory_space<vmem>>, vector<1x128xf32>
    tpu.vector_store %arg8[%c0_28, %c0_29], %26 {strides = array<i32>} : memref<18x128xf32, #tpu.memory_space<vmem>>, vector<1x128xf32>,
    %cst_30 = arith.constant 0.000000e+00 : f32
    %28 = vector.broadcast %cst_30 : f32 to vector<1x128xf32>
    %c17_31 = arith.constant 17 : index
    %c0_32 = arith.constant 0 : index
    %29 = vector.load %arg8[%c17_31, %c0_32] : memref<18x128xf32, #tpu.memory_space<vmem>>, vector<1x128xf32>
    tpu.vector_store %arg8[%c17_31, %c0_32], %28 {strides = array<i32>} : memref<18x128xf32, #tpu.memory_space<vmem>>, vector<1x128xf32>,
    %c1_33 = arith.constant 1 : index
    %c0_34 = arith.constant 0 : index
    %30 = vector.load %arg8[%c1_33, %c0_34] : memref<18x128xf32, #tpu.memory_space<vmem>>, vector<16x128xf32>
    tpu.vector_store %arg8[%c1_33, %c0_34], %25 {strides = array<i32>} : memref<18x128xf32, #tpu.memory_space<vmem>>, vector<16x128xf32>,
    %c0_35 = arith.constant 0 : index
    %c0_36 = arith.constant 0 : index
    %31 = vector.load %arg5[%c0_35, %c0_36] : memref<1x128xf32, #tpu.memory_space<vmem>>, vector<1x128xf32>
    %c0_37 = arith.constant 0 : index
    %c0_38 = arith.constant 0 : index
    %32 = vector.load %arg8[%c0_37, %c0_38] : memref<18x128xf32, #tpu.memory_space<vmem>>, vector<16x128xf32>
    %c0_39 = arith.constant 0 : index
    %c0_40 = arith.constant 0 : index
    %c0_41 = arith.constant 0 : index
    %33 = vector.load %arg4[%c0_39, %c0_40, %c0_41] : memref<4x128x128xf32, #tpu.memory_space<vmem>>, vector<1x128x128xf32>
    %34 = vector.shape_cast %33 : vector<1x128x128xf32> to vector<128x128xf32>
    %cst_42 = arith.constant dense<0.000000e+00> : vector<16x128xf32>
    %35 = tpu.matmul %32, %34, %cst_42 {dimension_numbers = #tpu.dot_dimension_numbers<[1], [0], [0], [1], [0, 0, 1, 1], [], []>} : vector<16x128xf32>, vector<128x128xf32>, vector<16x128xf32> -> vector<16x128xf32>
    %c1_43 = arith.constant 1 : index
    %c0_44 = arith.constant 0 : index
    %c0_45 = arith.constant 0 : index
    %36 = vector.load %arg4[%c1_43, %c0_44, %c0_45] : memref<4x128x128xf32, #tpu.memory_space<vmem>>, vector<1x128x128xf32>
    %37 = vector.shape_cast %36 : vector<1x128x128xf32> to vector<128x128xf32>
    %cst_46 = arith.constant dense<0.000000e+00> : vector<16x128xf32>
    %38 = tpu.matmul %25, %37, %cst_46 {dimension_numbers = #tpu.dot_dimension_numbers<[1], [0], [0], [1], [0, 0, 1, 1], [], []>} : vector<16x128xf32>, vector<128x128xf32>, vector<16x128xf32> -> vector<16x128xf32>
    %39 = arith.addf %35, %38 : vector<16x128xf32>
    %c2_47 = arith.constant 2 : index
    %c0_48 = arith.constant 0 : index
    %c0_49 = arith.constant 0 : index
    %40 = vector.load %arg4[%c2_47, %c0_48, %c0_49] : memref<4x128x128xf32, #tpu.memory_space<vmem>>, vector<1x128x128xf32>
    %41 = vector.shape_cast %40 : vector<1x128x128xf32> to vector<128x128xf32>
    %cst_50 = arith.constant dense<0.000000e+00> : vector<16x128xf32>
    %42 = tpu.matmul %25, %41, %cst_50 {dimension_numbers = #tpu.dot_dimension_numbers<[1], [0], [0], [1], [0, 0, 1, 1], [], []>} : vector<16x128xf32>, vector<128x128xf32>, vector<16x128xf32> -> vector<16x128xf32>
    %c2_51 = arith.constant 2 : index
    %c0_52 = arith.constant 0 : index
    %43 = vector.load %arg8[%c2_51, %c0_52] : memref<18x128xf32, #tpu.memory_space<vmem>>, vector<16x128xf32>
    %c3 = arith.constant 3 : index
    %c0_53 = arith.constant 0 : index
    %c0_54 = arith.constant 0 : index
    %44 = vector.load %arg4[%c3, %c0_53, %c0_54] : memref<4x128x128xf32, #tpu.memory_space<vmem>>, vector<1x128x128xf32>
    %45 = vector.shape_cast %44 : vector<1x128x128xf32> to vector<128x128xf32>
    %cst_55 = arith.constant dense<0.000000e+00> : vector<16x128xf32>
    %46 = tpu.matmul %43, %45, %cst_55 {dimension_numbers = #tpu.dot_dimension_numbers<[1], [0], [0], [1], [0, 0, 1, 1], [], []>} : vector<16x128xf32>, vector<128x128xf32>, vector<16x128xf32> -> vector<16x128xf32>
    %47 = arith.addf %42, %46 : vector<16x128xf32>
    %48 = vector.broadcast %31 : vector<1x128xf32> to vector<16x128xf32>
    %49 = arith.addf %39, %48 : vector<16x128xf32>
    %cst_56 = arith.constant 0.000000e+00 : f32
    %50 = vector.broadcast %cst_56 : f32 to vector<16x128xf32>
    %51 = arith.maximumf %49, %50 : vector<16x128xf32>
    %c0_57 = arith.constant 0 : index
    %c0_58 = arith.constant 0 : index
    %c0_59 = arith.constant 0 : index
    %c0_60 = arith.constant 0 : index
    %52 = vector.load %arg6[%c0_57, %c0_58, %c0_59, %c0_60] : memref<1x2x16x128xf32, #tpu.memory_space<vmem>>, vector<1x1x16x128xf32>
    %53 = vector.shape_cast %52 : vector<1x1x16x128xf32> to vector<16x128xf32>
    %54 = vector.shape_cast %51 : vector<16x128xf32> to vector<1x1x16x128xf32>
    tpu.vector_store %arg6[%c0_57, %c0_58, %c0_59, %c0_60], %54 {strides = array<i32>} : memref<1x2x16x128xf32, #tpu.memory_space<vmem>>, vector<1x1x16x128xf32>,
    %55 = vector.broadcast %31 : vector<1x128xf32> to vector<16x128xf32>
    %56 = arith.addf %47, %55 : vector<16x128xf32>
    %cst_61 = arith.constant 0.000000e+00 : f32
    %57 = vector.broadcast %cst_61 : f32 to vector<16x128xf32>
    %58 = arith.maximumf %56, %57 : vector<16x128xf32>
    %c0_62 = arith.constant 0 : index
    %c1_63 = arith.constant 1 : index
    %c0_64 = arith.constant 0 : index
    %c0_65 = arith.constant 0 : index
    %59 = vector.load %arg6[%c0_62, %c1_63, %c0_64, %c0_65] : memref<1x2x16x128xf32, #tpu.memory_space<vmem>>, vector<1x1x16x128xf32>
    %60 = vector.shape_cast %59 : vector<1x1x16x128xf32> to vector<16x128xf32>
    %61 = vector.shape_cast %58 : vector<16x128xf32> to vector<1x1x16x128xf32>
    tpu.vector_store %arg6[%c0_62, %c1_63, %c0_64, %c0_65], %61 {strides = array<i32>} : memref<1x2x16x128xf32, #tpu.memory_space<vmem>>, vector<1x1x16x128xf32>,
    return
  }
  func.func @transform_0(%arg0: i32) -> (i32, i32, i32) {
    %c0_i32 = arith.constant 0 : i32
    %c0_i32_0 = arith.constant 0 : i32
    %c0_i32_1 = arith.constant 0 : i32
    return %arg0, %c0_i32, %c0_i32_0 : i32, i32, i32
  }
  func.func @transform_1(%arg0: i32) -> (i32, i32, i32) {
    %c0_i32 = arith.constant 0 : i32
    %c0_i32_0 = arith.constant 0 : i32
    %c0_i32_1 = arith.constant 0 : i32
    %c0_i32_2 = arith.constant 0 : i32
    return %c0_i32, %c0_i32_0, %c0_i32_1 : i32, i32, i32
  }
  func.func @transform_2(%arg0: i32) -> (i32, i32) {
    %c0_i32 = arith.constant 0 : i32
    %c0_i32_0 = arith.constant 0 : i32
    %c0_i32_1 = arith.constant 0 : i32
    return %c0_i32, %c0_i32_0 : i32, i32
  }
  func.func @transform_3(%arg0: i32) -> (i32, i32, i32) {
    %c0_i32 = arith.constant 0 : i32
    %c0_i32_0 = arith.constant 0 : i32
    %c0_i32_1 = arith.constant 0 : i32
    %c0_i32_2 = arith.constant 0 : i32
    return %c0_i32, %c0_i32_0, %c0_i32_1 : i32, i32, i32
  }
  func.func @transform_4(%arg0: i32) -> (i32, i32) {
    %c0_i32 = arith.constant 0 : i32
    %c0_i32_0 = arith.constant 0 : i32
    %c0_i32_1 = arith.constant 0 : i32
    return %c0_i32, %c0_i32_0 : i32, i32
  }
  func.func @transform_5(%arg0: i32) -> (i32, i32, i32, i32) {
    %c0_i32 = arith.constant 0 : i32
    %c0_i32_0 = arith.constant 0 : i32
    %c0_i32_1 = arith.constant 0 : i32
    %c0_i32_2 = arith.constant 0 : i32
    return %arg0, %c0_i32, %c0_i32_0, %c0_i32_1 : i32, i32, i32, i32
  }
}

</mosaic_0001>

<bundles_post_ra>
// kernel: decoder_block_resnet.1
= control target key start
LH: loop header
LB: loop body
LE: loop exit
PB: predicated region body
PF: predicated region fallthrough
CT: control target
= control target key end

     0   :  { %10 = vsyncpa [#allocation5], 0  ;;  %s1618_s18 = smov 0   ;;  %s1769_s0 = inlined_call_operand.vmem [shape: f32[2,16,64], index: 0, kind: input, shape index: {}]   ;;  %s1770_s1 = inlined_call_operand.vmem [shape: f32[3,64,128], index: 1, kind: input, shape index: {}]   ;;  %s1771_s2 = inlined_call_operand.vmem [shape: f32[1,128], index: 2, kind: input, shape index: {}]   ;;  %s1772_s3 = inlined_call_operand.hbm [shape: f32[4,128,128], index: 3, kind: input, shape index: {}]   ;;  %s1773_s4 = inlined_call_operand.vmem [shape: f32[1,128], index: 4, kind: input, shape index: {}]   ;;  %s1774_s5 = inlined_call_operand.vmem [shape: f32[2,2,16,128], index: 5, kind: output, shape index: {}]  }
   0x1 LB: > { %s1624_s19 = sadd.s32 4294967295, %s1582_s18   ;;  %p1000_p0 = scmp.ge.s32.totalorder %s1582_s18, 1  ;;  %s1582_s18 = sphi %s1618_s18, %s16_s18  }
   0x2   : > { %p157_p1 = scmp.lt.s32.totalorder %s1582_s18, 3  ;;  %s1584_s20 = smov [#allocation4]  }
   0x3   : > { %s175_s21 = sshll.u32 %s1584_s20, 4  ;;  %p1775_p3 = scmp.eq.s32.totalorder %s1624_s19, 0  ;;  %s176_s21 = int_to_ptr.vmem [resolvable:$true] %s175_s21 }
   0x4   : > { %p1628_p2 = pnand %p1000_p0, %p157_p1  ;;  %s1544_s26 = scalar_lea.hbm %s1772_s3, 8192 }
   0x5   : > { %p1545_p6 = scmp.ne.s32.totalorder %s1772_s3, %s1544_s26  ;;  %p1551_p10 = scmp.lt.u32.totalorder %s1544_s26, %s1772_s3 }
   0x6   : > { %s1777_s22 = scalar_select %p1628_p2, 1, 0 }
   0x7   : > { %p1526_p4 = pneg %p1628_p2 }
   0x9   : > { %p1637_p5 = pnand %p1775_p3, %p1526_p4 }
   0xb   : > { %p1546_p7 = pneg %p1637_p5 }
   0xd   : > { %p1547_p8 = pnand %p1546_p7, %p1545_p6 }
   0xf   : > { %p1548_p9 = pneg %p1547_p8 }
  0x11   : > { %p1553_p11 = pnand %p1551_p10, %p1548_p9 }
  0x13   : > { %1556 = shalt.err (!%p1553_p11)
}
  0x14   : > { %s1557_s6 = scalar_lea.vmem %s176_s21, 8192  ;;  %p1565_p1 = scmp.lt.s32.totalorder %s176_s21, %s176_s21 }
  0x15   : > { %p1558_p12 = scmp.ne.s32.totalorder %s176_s21, %s1557_s6  ;;  %p1566_p4 = scmp.lt.s32.totalorder %s1557_s6, %s1557_s6 }
  0x17   : > { %p1560_p13 = pnand %p1558_p12, %p1546_p7  ;;  %p1567_p3 = por %p1566_p4, %p1565_p1 }
  0x19   : > { %p1561_p0 = pneg %p1560_p13 }
  0x1b   : > { %p1568_p2 = pnand %p1567_p3, %p1561_p0 }
  0x1d   : > { %1571 = shalt.err (!%p1568_p2)
}
  0x1e   : > { %s1585_s7 = smov 128   ;;  %s1586_s8 = smov 8  }
  0x1f   : > { %1529 = dma.hbm_to_vmem [thread:$0]  (!%p1637_p5), %s1772_s3, 8192, %s176_s21, [#allocation5], %s1585_s7, %s1585_s7, %s1586_s8  }
  0x20   : > { %p1779_p6 = scmp.ne.s32.totalorder %s1777_s22, 0 }
  0x21   : > { %p1780_p8 = scmp.eq.s32.totalorder (!%p1779_p6), %s1624_s19, 0 }
  0x22   : > { %202 = sbr.rel (%p1779_p6) target bundleno = 556 (0x22c), region = 40 }
  0x29   : > { %1577 = dma.done.wait (%p1780_p8), [#allocation5], 8192   ;;  %p1781_p7 = pmov %p1780_p8 }
  0x2a   : > { %p230_p2 = scmp.lt.s32.totalorder %s1624_s19, 1  ;;  %vm240_vm0 = vcmask 516096   ;;  %v1587_v0 = vmov 0.0   ;;  %v250_v1 = vld [vmem:[%s1770_s1] sm:$0xff]  ;;  %v251_v2 = vld [vmem:[%s1770_s1 + $0x8] sm:$0xff]  ;;  %v252_v3 = vld [vmem:[%s1770_s1 + $0x10] sm:$0xff] }
  0x2b   : > { %1579 = vsyncadd (%p1781_p7), [#allocation5], 4294959104  ;;  %241 = vst.msk [vmem:[#allocation2] sm:$0x1] %vm240_vm0, %v1587_v0  ;;  %v1354_v4 = vpack.c.bf16 %v251_v2, %v250_v1  ;;  %v253_v5 = vld [vmem:[%s1770_s1 + $0x18] sm:$0xff]  ;;  %vm245_vm1 = vcmask 523264  }
  0x2c   : > { %242 = vst.msk [vmem:[#allocation2 + $0x11] sm:$0x1] %vm240_vm0, %v1587_v0  ;;  %536 = vst [vmem:[#allocation3] sm:$0x1] %v1587_v0  ;;  %s1783_s19 = smov (!%p230_p2, %s1624_s19), 1  ;;  %v1358_v6 = vpack.c.bf16 %v253_v5, %v252_v3  ;;  %v254_v7 = vld [vmem:[%s1770_s1 + $0x20] sm:$0xff] }
  0x2d   : > { %537 = vst [vmem:[#allocation3 + $0x11] sm:$0x1] %v1587_v0  ;;  %s1037_s11 = sshll.u32 %s1783_s19, 4  ;;  %v255_v8 = vld [vmem:[%s1770_s1 + $0x28] sm:$0xff]  ;;  %v1009_v9 = vld [vmem:[%s1770_s1 + $0x40] sm:$0xff]  ;;  %1355 = vmatprep.subr.bf16.mxu0 %v1354_v4  ;;  %v1011_v14 = vld [vmem:[%s1770_s1 + $0x50] sm:$0xff] }
  0x2e   : > { %s234_s22 = scalar_lea.vmem %s1769_s0, %s1037_s11  ;;  %v1010_v10 = vld [vmem:[%s1770_s1 + $0x48] sm:$0xff]  ;;  %1357 = vmatpush3.bf16.msra.mxu0 %v1354_v4  ;;  %v1362_v15 = vpack.c.bf16 %v255_v8, %v254_v7  ;;  %v256_v16 = vld [vmem:[%s1770_s1 + $0x30] sm:$0xff]  ;;  %v1012_v17 = vld [vmem:[%s1770_s1 + $0x58] sm:$0xff]  ;;  %s1038_s23 = sshll.u32 %s1783_s19, 5 }
  0x2f   : > { %v243_v11 = vld [vmem:[%s234_s22] sm:$0xff]  ;;  %v244_v12 = vld [vmem:[%s234_s22 + $0x8] sm:$0xff]  ;;  %v1338_v13 = vpack.c.bf16 %v1010_v10, %v1009_v9  ;;  %1359 = vmatprep.subr.bf16.mxu0 %v1358_v6  ;;  %v257_v18 = vld [vmem:[%s1770_s1 + $0x38] sm:$0xff]  ;;  %v1342_v19 = vpack.c.bf16 %v1012_v17, %v1011_v14  ;;  %s239_s26 = scalar_lea.vmem %s1774_s5, %s1038_s23 }
  0x30   : > { %246 = vst.msk [vmem:[#allocation2 + $0x1] sm:$0xff] %vm245_vm1, %v243_v11  ;;  %247 = vst.msk [vmem:[#allocation2 + $0x9] sm:$0xff] %vm245_vm1, %v244_v12  ;;  %v1013_v20 = vld [vmem:[%s1770_s1 + $0x60] sm:$0xff]  ;;  %v1014_v21 = vld [vmem:[%s1770_s1 + $0x68] sm:$0xff]  ;;  %v1366_v22 = vpack.c.bf16 %v257_v18, %v256_v16 }
  0x31   : > { %1339 = vmatprep.subr.bf16.mxu1 %v1338_v13  ;;  %v1346_v23 = vpack.c.bf16 %v1014_v21, %v1013_v20  ;;  %v1015_v24 = vld [vmem:[%s1770_s1 + $0x70] sm:$0xff]  ;;  %v1016_v25 = vld [vmem:[%s1770_s1 + $0x78] sm:$0xff]  ;;  %v1021_v26 = vld [vmem:[%s1770_s1 + $0x80] sm:$0xff] }
  0x32   : > { %1341 = vmatpush3.bf16.msra.mxu1 %v1338_v13  ;;  %1361 = vmatpush3.bf16.msra.mxu0 %v1358_v6  ;;  %v1022_v27 = vld [vmem:[%s1770_s1 + $0x88] sm:$0xff]  ;;  %v1350_v30 = vpack.c.bf16 %v1016_v25, %v1015_v24  ;;  %v1023_v32 = vld [vmem:[%s1770_s1 + $0x90] sm:$0xff]  ;;  %v1024_v33 = vld [vmem:[%s1770_s1 + $0x98] sm:$0xff] }
  0x33   : > { %1343 = vmatprep.subr.bf16.mxu1 %v1342_v19  ;;  %1363 = vmatprep.subr.bf16.mxu0 %v1362_v15  ;;  %v1370_v31 = vpack.c.bf16 %v1022_v27, %v1021_v26  ;;  %v560_v34 = vld [vmem:[#allocation4 + $0x80] sm:$0xff]  ;;  %v561_v35 = vld [vmem:[#allocation4 + $0x88] sm:$0xff]  ;;  %v1374_v37 = vpack.c.bf16 %v1024_v33, %v1023_v32  ;;  %v562_v40 = vld [vmem:[#allocation4 + $0x90] sm:$0xff] }
  0x34   : > { %v1386_v39 = vpack.c.bf16 %v561_v35, %v560_v34  ;;  %v563_v41 = vld [vmem:[#allocation4 + $0x98] sm:$0xff]  ;;  %v1025_v42 = vld [vmem:[%s1770_s1 + $0xa0] sm:$0xff]  ;;  %v564_v47 = vld [vmem:[#allocation4 + $0xa0] sm:$0xff] }
  0x35   : > { %v1026_v43 = vld [vmem:[%s1770_s1 + $0xa8] sm:$0xff]  ;;  %v1390_v45 = vpack.c.bf16 %v563_v41, %v562_v40  ;;  %v565_v48 = vld [vmem:[#allocation4 + $0xa8] sm:$0xff]  ;;  %v1027_v49 = vld [vmem:[%s1770_s1 + $0xb0] sm:$0xff] }
  0x36   : > { %1345 = vmatpush3.bf16.msra.mxu1 %v1342_v19  ;;  %1365 = vmatpush3.bf16.msra.mxu0 %v1362_v15  ;;  %v1378_v46 = vpack.c.bf16 %v1026_v43, %v1025_v42  ;;  %v1028_v50 = vld [vmem:[%s1770_s1 + $0xb8] sm:$0xff]  ;;  %v1394_v51 = vpack.c.bf16 %v565_v48, %v564_v47  ;;  %v566_v53 = vld [vmem:[#allocation4 + $0xb0] sm:$0xff]  ;;  %v567_v54 = vld [vmem:[#allocation4 + $0xb8] sm:$0xff] }
  0x37   : > { %v248_v28 = vld [vmem:[#allocation2] sm:$0xff]  ;;  %1367 = vmatprep.subr.bf16.mxu0 %v1366_v22  ;;  %1347 = vmatprep.subr.bf16.mxu1 %v1346_v23  ;;  %v249_v36 = vld [vmem:[#allocation2 + $0x8] sm:$0xff]  ;;  %v1382_v52 = vpack.c.bf16 %v1028_v50, %v1027_v49  ;;  %v746_v55 = vld [vmem:[#allocation4 + $0x180] sm:$0xff]  ;;  %v1398_v57 = vpack.c.bf16 %v567_v54, %v566_v53 }
  0x38   : > { %v258_v29 = vld [vmem:[#allocation2 + $0x1] sm:$0xff]  ;;  %1176 = vmatprep.mubr.msk.f32.mxu0 %vm245_vm1, %v248_v28  ;;  %v259_v44 = vld [vmem:[#allocation2 + $0x9] sm:$0xff]  ;;  %v747_v56 = vld [vmem:[#allocation4 + $0x188] sm:$0xff] }
  0x39   : > { %1157 = vmatprep.mubr.msk.f32.mxu1 %vm245_vm1, %v258_v29  ;;  %v431_v38 = vld [vmem:[#allocation2 + $0x2] sm:$0xff]  ;;  %v1450_v58 = vpack.c.bf16 %v747_v56, %v746_v55  ;;  %v568_v59 = vld [vmem:[#allocation4 + $0xc0] sm:$0xff]  ;;  %v569_v60 = vld [vmem:[#allocation4 + $0xc8] sm:$0xff] }
  0x3a   : > { %1349 = vmatpush3.bf16.msra.mxu1 %v1346_v23  ;;  %1369 = vmatpush3.bf16.msra.mxu0 %v1366_v22  ;;  %v748_v61 = vld [vmem:[#allocation4 + $0x190] sm:$0xff]  ;;  %v749_v62 = vld [vmem:[#allocation4 + $0x198] sm:$0xff]  ;;  %v1402_v0 = vpack.c.bf16 %v569_v60, %v568_v59  ;;  %v750_v4 = vld [vmem:[#allocation4 + $0x1a0] sm:$0xff] }
  0x3b   : > { %1351 = vmatprep.subr.bf16.mxu1 %v1350_v30  ;;  %1371 = vmatprep.subr.bf16.mxu0 %v1370_v31  ;;  %v432_v63 = vld [vmem:[#allocation2 + $0xa] sm:$0xff]  ;;  %v1454_v1 = vpack.c.bf16 %v749_v62, %v748_v61  ;;  %v570_v2 = vld [vmem:[#allocation4 + $0xd0] sm:$0xff]  ;;  %v751_v5 = vld [vmem:[#allocation4 + $0x1a8] sm:$0xff] }
  0x3c   : > { %v571_v3 = vld [vmem:[#allocation4 + $0xd8] sm:$0xff]  ;;  %v1458_v7 = vpack.c.bf16 %v751_v5, %v750_v4  ;;  %v752_v8 = vld [vmem:[#allocation4 + $0x1b0] sm:$0xff]  ;;  %v572_v11 = vld [vmem:[#allocation4 + $0xe0] sm:$0xff] }
  0x3d   : > { %1177 = vmatmul.mubr.msk.f32.vlgmr.msra.gmra.mrb[0].mxu0 %vm245_vm1, %v249_v36  ;;  %v1406_v6 = vpack.c.bf16 %v571_v3, %v570_v2  ;;  %v753_v9 = vld [vmem:[#allocation4 + $0x1b8] sm:$0xff]  ;;  %v573_v12 = vld [vmem:[#allocation4 + $0xe8] sm:$0xff]  ;;  %v754_v13 = vld [vmem:[#allocation4 + $0x1c0] sm:$0xff] }
  0x3e   : > { %1353 = vmatpush3.bf16.msra.mxu1 %v1350_v30  ;;  %1373 = vmatpush3.bf16.msra.mxu0 %v1370_v31  ;;  %v1462_v10 = vpack.c.bf16 %v753_v9, %v752_v8  ;;  %v1410_v14 = vpack.c.bf16 %v573_v12, %v572_v11  ;;  %v755_v15 = vld [vmem:[#allocation4 + $0x1c8] sm:$0xff]  ;;  %v574_v17 = vld [vmem:[#allocation4 + $0xf0] sm:$0xff]  ;;  %v575_v18 = vld [vmem:[#allocation4 + $0xf8] sm:$0xff] }
  0x3f   : > { %1195 = vmatprep.mubr.msk.f32.mxu0 %vm245_vm1, %v431_v38  ;;  %1375 = vmatprep.subr.bf16.mxu0 %v1374_v37  ;;  %v1466_v16 = vpack.c.bf16 %v755_v15, %v754_v13  ;;  %v1414_v19 = vpack.c.bf16 %v575_v18, %v574_v17  ;;  %v756_v20 = vld [vmem:[#allocation4 + $0x1d0] sm:$0xff]  ;;  %v757_v21 = vld [vmem:[#allocation4 + $0x1d8] sm:$0xff]  ;;  %v543_v23 = vld [vmem:[#allocation4] sm:$0xff] }
  0x40   : > { %1387 = vmatprep.subr.bf16.mxu1 %v1386_v39  ;;  %v1470_v22 = vpack.c.bf16 %v757_v21, %v756_v20  ;;  %v544_v24 = vld [vmem:[#allocation4 + $0x8] sm:$0xff]  ;;  %v758_v25 = vld [vmem:[#allocation4 + $0x1e0] sm:$0xff]  ;;  %v760_v29 = vld [vmem:[#allocation4 + $0x1f0] sm:$0xff] }
  0x41   : > { %1158 = vmatmul.mubr.msk.f32.vlgmr.msra.gmra.mrb[0].mxu1 %vm245_vm1, %v259_v44  ;;  %v1418_v26 = vpack.c.bf16 %v544_v24, %v543_v23  ;;  %v759_v27 = vld [vmem:[#allocation4 + $0x1e8] sm:$0xff]  ;;  %v761_v30 = vld [vmem:[#allocation4 + $0x1f8] sm:$0xff]  ;;  %v727_v32 = vld [vmem:[#allocation4 + $0x100] sm:$0xff] }
  0x42   : > { %1389 = vmatpush3.bf16.msra.mxu1 %v1386_v39  ;;  %1377 = vmatpush3.bf16.msra.mxu0 %v1374_v37  ;;  %v1474_v28 = vpack.c.bf16 %v759_v27, %v758_v25  ;;  %v1478_v31 = vpack.c.bf16 %v761_v30, %v760_v29  ;;  %v728_v33 = vld [vmem:[#allocation4 + $0x108] sm:$0xff]  ;;  %v1031_v38 = vld [vmem:[%s1771_s2] ss:$0 sm:$0xff]  ;;  %v547_v49 = vld [vmem:[#allocation4 + $0x20] sm:$0xff] }
  0x43   : > { %1391 = vmatprep.subr.bf16.mxu1 %v1390_v45  ;;  %1379 = vmatprep.subr.bf16.mxu0 %v1378_v46  ;;  %v1482_v34 = vpack.c.bf16 %v728_v33, %v727_v32  ;;  %v545_v44 = vld [vmem:[#allocation4 + $0x10] sm:$0xff]  ;;  %v548_v50 = vld [vmem:[#allocation4 + $0x28] sm:$0xff]  ;;  %v550_v53 = vld [vmem:[#allocation4 + $0x38] sm:$0xff] }
  0x44   : > { %v729_v54 = vld [vmem:[#allocation4 + $0x110] sm:$0xff]  ;;  %v730_v55 = vld [vmem:[#allocation4 + $0x118] sm:$0xff]  ;;  %v551_v56 = vld [vmem:[#allocation4 + $0x40] sm:$0xff] }
  0x45   : > { %v552_v60 = vld [vmem:[#allocation4 + $0x48] sm:$0xff]  ;;  %v1486_v62 = vpack.c.bf16 %v730_v55, %v729_v54  ;;  %v553_v3 = vld [vmem:[#allocation4 + $0x50] sm:$0xff]  ;;  %v554_v4 = vld [vmem:[#allocation4 + $0x58] sm:$0xff] }
  0x46   : > { %1393 = vmatpush3.bf16.msra.mxu1 %v1390_v45  ;;  %1381 = vmatpush3.bf16.msra.mxu0 %v1378_v46  ;;  %v546_v45 = vld [vmem:[#allocation4 + $0x18] sm:$0xff]  ;;  %v733_v5 = vld [vmem:[#allocation4 + $0x130] sm:$0xff]  ;;  %v555_v9 = vld [vmem:[#allocation4 + $0x60] sm:$0xff] }
  0x47   : > { %1395 = vmatprep.subr.bf16.mxu1 %v1394_v51  ;;  %1383 = vmatprep.subr.bf16.mxu0 %v1382_v52  ;;  %v1422_v48 = vpack.c.bf16 %v546_v45, %v545_v44  ;;  %v735_v11 = vld [vmem:[#allocation4 + $0x140] sm:$0xff]  ;;  %v736_v12 = vld [vmem:[#allocation4 + $0x148] sm:$0xff]  ;;  %v557_v15 = vld [vmem:[#allocation4 + $0x70] sm:$0xff] }
  0x48   : > { %v737_v17 = vld [vmem:[#allocation4 + $0x150] sm:$0xff]  ;;  %v738_v18 = vld [vmem:[#allocation4 + $0x158] sm:$0xff]  ;;  %v739_v21 = vld [vmem:[#allocation4 + $0x160] sm:$0xff] }
  0x49   : > { %v1502_v20 = vpack.c.bf16 %v738_v18, %v737_v17  ;;  %v741_v24 = vld [vmem:[#allocation4 + $0x170] sm:$0xff]  ;;  %v742_v25 = vld [vmem:[#allocation4 + $0x178] sm:$0xff] }
  0x4a   : > { %1397 = vmatpush3.bf16.msra.mxu1 %v1394_v51  ;;  %1385 = vmatpush3.bf16.msra.mxu0 %v1382_v52  ;;  %v1426_v51 = vpack.c.bf16 %v548_v50, %v547_v49  ;;  %v549_v52 = vld [vmem:[#allocation4 + $0x30] sm:$0xff] }
  0x4b   : > { %1399 = vmatprep.subr.bf16.mxu1 %v1398_v57  ;;  %1451 = vmatprep.subr.bf16.mxu0 %v1450_v58  ;;  %v1430_v59 = vpack.c.bf16 %v550_v53, %v549_v52 }
  0x4d   : > { %1196 = vmatmul.mubr.msk.f32.vlgmr.msra.gmra.mrb[0].mxu0 %vm245_vm1, %v432_v63  ;;  %v731_v63 = vld [vmem:[#allocation4 + $0x120] sm:$0xff] }
  0x4e   : > { %1401 = vmatpush3.bf16.msra.mxu1 %v1398_v57  ;;  %1453 = vmatpush3.bf16.msra.mxu0 %v1450_v58 }
  0x4f   : > { %1403 = vmatprep.subr.bf16.mxu1 %v1402_v0  ;;  %1455 = vmatprep.subr.bf16.mxu0 %v1454_v1 }
  0x52   : > { %1405 = vmatpush3.bf16.msra.mxu1 %v1402_v0  ;;  %1457 = vmatpush3.bf16.msra.mxu0 %v1454_v1  ;;  %v732_v0 = vld [vmem:[#allocation4 + $0x128] sm:$0xff]  ;;  %v1434_v1 = vpack.c.bf16 %v552_v60, %v551_v56 }
  0x53   : > { %1407 = vmatprep.subr.bf16.mxu1 %v1406_v6  ;;  %1459 = vmatprep.subr.bf16.mxu0 %v1458_v7  ;;  %v1490_v2 = vpack.c.bf16 %v732_v0, %v731_v63 }
  0x56   : > { %1409 = vmatpush3.bf16.msra.mxu1 %v1406_v6  ;;  %1461 = vmatpush3.bf16.msra.mxu0 %v1458_v7  ;;  %v734_v6 = vld [vmem:[#allocation4 + $0x138] sm:$0xff]  ;;  %v1438_v7 = vpack.c.bf16 %v554_v4, %v553_v3 }
  0x57   : > { %1463 = vmatprep.subr.bf16.mxu0 %v1462_v10  ;;  %1411 = vmatprep.subr.bf16.mxu1 %v1410_v14  ;;  %v1494_v8 = vpack.c.bf16 %v734_v6, %v733_v5 }
  0x5a   : > { %1465 = vmatpush3.bf16.msra.mxu0 %v1462_v10  ;;  %1413 = vmatpush3.bf16.msra.mxu1 %v1410_v14  ;;  %v556_v10 = vld [vmem:[#allocation4 + $0x68] sm:$0xff]  ;;  %v1498_v14 = vpack.c.bf16 %v736_v12, %v735_v11 }
  0x5b   : > { %1467 = vmatprep.subr.bf16.mxu0 %v1466_v16  ;;  %1415 = vmatprep.subr.bf16.mxu1 %v1414_v19  ;;  %v1442_v13 = vpack.c.bf16 %v556_v10, %v555_v9 }
  0x5e   : > { %1469 = vmatpush3.bf16.msra.mxu0 %v1466_v16  ;;  %1417 = vmatpush3.bf16.msra.mxu1 %v1414_v19  ;;  %v558_v16 = vld [vmem:[#allocation4 + $0x78] sm:$0xff] }
  0x5f   : > { %1471 = vmatprep.subr.bf16.mxu0 %v1470_v22  ;;  %1419 = vmatprep.subr.bf16.mxu1 %v1418_v26  ;;  %v1446_v19 = vpack.c.bf16 %v558_v16, %v557_v15 }
  0x62   : > { %1473 = vmatpush3.bf16.msra.mxu0 %v1470_v22  ;;  %v740_v22 = vld [vmem:[#allocation4 + $0x168] sm:$0xff] }
  0x63   : > { %1475 = vmatprep.subr.bf16.mxu0 %v1474_v28  ;;  %v1506_v23 = vpack.c.bf16 %v740_v22, %v739_v21 }
  0x66   : > { %1477 = vmatpush3.bf16.msra.mxu0 %v1474_v28  ;;  %v1032_v28 = vld [vmem:[%s1773_s4] ss:$0 sm:$0xff] }
  0x67   : > { %1479 = vmatprep.subr.bf16.mxu0 %v1478_v31 }
  0x6a   : > { %1481 = vmatpush3.bf16.msra.mxu0 %v1478_v31 }
  0x6b   : > { %1483 = vmatprep.subr.bf16.mxu0 %v1482_v34 }
 0x114   : > { %v1159_v35 = vpop.f32.mrb[0].mxu1 }
 0x115   : > { %v341_v36 = vpop.f32.mrb[1].mxu1 }
 0x120   : > { %v1197_v37 = vpop.f32.mrb[0].mxu0 }
 0x121   : > { %v1514_v39 = vadd.f32 %v1197_v37, %v1159_v35  ;;  %v514_v40 = vpop.f32.mrb[1].mxu0 }
 0x122   : > { %v1515_v41 = vadd.f32 %v514_v40, %v341_v36 }
 0x123   : > { %v533_v42 = vadd.f32 %v1514_v39, %v1031_v38 }
 0x124   : > { %v532_v43 = vadd.f32 %v1515_v41, %v1031_v38 }
 0x125   : > { %v1754_v46 = vmax.f32 %v533_v42, 0.0 }
 0x126   : > { %v534_v47 = vmax.f32 %v532_v43, 0.0 }
 0x127   : > { %539 = vst [vmem:[#allocation3 + $0x9] sm:$0xff] %v1754_v46 }
 0x128   : > { %538 = vst [vmem:[#allocation3 + $0x1] sm:$0xff] %v534_v47  ;;  %1230 = vmatprep.mubr.f32.mxu1 %v534_v47 }
 0x129   : > { %1231 = vmatmul.mubr.f32.vlgmr.msra.gmra.mrb[2].mxu1 %v1754_v46 }
 0x12a   : > { %1421 = vmatpush3.bf16.msra.mxu1 %v1418_v26  ;;  %v1510_v26 = vpack.c.bf16 %v742_v25, %v741_v24 }
 0x12b   : > { %1423 = vmatprep.subr.bf16.mxu1 %v1422_v48 }
 0x12e   : > { %1425 = vmatpush3.bf16.msra.mxu1 %v1422_v48  ;;  %v744_v61 = vld [vmem:[#allocation3 + $0xa] sm:$0xff] }
 0x12f   : > { %1427 = vmatprep.subr.bf16.mxu1 %v1426_v51  ;;  %v541_v57 = vld [vmem:[#allocation3] sm:$0xff]  ;;  %v542_v27 = vld [vmem:[#allocation3 + $0x8] sm:$0xff] }
 0x130   : > { %v743_v58 = vld [vmem:[#allocation3 + $0x2] sm:$0xff]  ;;  %1265 = vmatprep.mubr.f32.mxu1 %v541_v57 }
 0x131   : > { %1300 = vmatprep.mubr.f32.mxu0 %v743_v58 }
 0x132   : > { %1301 = vmatmul.mubr.f32.vlgmr.msra.gmra.mrb[2].mxu0 %v744_v61  ;;  %1429 = vmatpush3.bf16.msra.mxu1 %v1426_v51 }
 0x133   : > { %1485 = vmatpush3.bf16.msra.mxu0 %v1482_v34  ;;  %1335 = vmatprep.mubr.f32.mxu0 %v534_v47 }
 0x134   : > { %1431 = vmatprep.subr.bf16.mxu1 %v1430_v59  ;;  %1487 = vmatprep.subr.bf16.mxu0 %v1486_v62 }
 0x136   : > { %1433 = vmatpush3.bf16.msra.mxu1 %v1430_v59 }
 0x137   : > { %1489 = vmatpush3.bf16.msra.mxu0 %v1486_v62  ;;  %1435 = vmatprep.subr.bf16.mxu1 %v1434_v1 }
 0x138   : > { %1491 = vmatprep.subr.bf16.mxu0 %v1490_v2 }
 0x13a   : > { %1437 = vmatpush3.bf16.msra.mxu1 %v1434_v1 }
 0x13b   : > { %1493 = vmatpush3.bf16.msra.mxu0 %v1490_v2  ;;  %1439 = vmatprep.subr.bf16.mxu1 %v1438_v7 }
 0x13c   : > { %1495 = vmatprep.subr.bf16.mxu0 %v1494_v8 }
 0x13e   : > { %1441 = vmatpush3.bf16.msra.mxu1 %v1438_v7 }
 0x13f   : > { %1497 = vmatpush3.bf16.msra.mxu0 %v1494_v8  ;;  %1443 = vmatprep.subr.bf16.mxu1 %v1442_v13 }
 0x140   : > { %1499 = vmatprep.subr.bf16.mxu0 %v1498_v14 }
 0x142   : > { %1445 = vmatpush3.bf16.msra.mxu1 %v1442_v13 }
 0x143   : > { %1501 = vmatpush3.bf16.msra.mxu0 %v1498_v14  ;;  %1447 = vmatprep.subr.bf16.mxu1 %v1446_v19 }
 0x144   : > { %1503 = vmatprep.subr.bf16.mxu0 %v1502_v20 }
 0x146   : > { %1449 = vmatpush3.bf16.msra.mxu1 %v1446_v19 }
 0x147   : > { %1505 = vmatpush3.bf16.msra.mxu0 %v1502_v20 }
 0x148   : > { %1507 = vmatprep.subr.bf16.mxu0 %v1506_v23 }
 0x149   : > { %1266 = vmatmul.mubr.f32.vlgmr.msra.gmra.mrb[2].mxu1 %v542_v27 }
 0x14b   : > { %1509 = vmatpush3.bf16.msra.mxu0 %v1506_v23 }
 0x14c   : > { %1511 = vmatprep.subr.bf16.mxu0 %v1510_v26 }
 0x14f   : > { %1513 = vmatpush3.bf16.msra.mxu0 %v1510_v26 }
 0x152   : > { %1336 = vmatmul.mubr.f32.vlgmr.msra.gmra.mrb[2].mxu0 %v1754_v46 }
 0x21c   : > { %v1267_v29 = vpop.f32.mrb[2].mxu1 }
 0x21d   : > { %v919_v30 = vadd.f32 %v1267_v29, %v1032_v28  ;;  %v717_v31 = vpop.f32.mrb[3].mxu1 }
 0x21e   : > { %v918_v32 = vadd.f32 %v1032_v28, %v717_v31 }
 0x21f   : > { %v921_v33 = vmax.f32 %v919_v30, 0.0 }
 0x220   : > { %v920_v34 = vmax.f32 %v918_v32, 0.0 }
 0x221   : > { %923 = vst [vmem:[%s239_s26 + $0x8] sm:$0xff] %v921_v33 }
 0x222   : > { %922 = vst [vmem:[%s239_s26] sm:$0xff] %v920_v34 }
 0x225   : > { %v1337_v35 = vpop.f32.mrb[2].mxu0 }
 0x226   : > { %v925_v36 = vadd.f32 %v1337_v35, %v1032_v28  ;;  %v903_v37 = vpop.f32.mrb[3].mxu0 }
 0x227   : > { %v924_v38 = vadd.f32 %v1032_v28, %v903_v37 }
 0x228   : > { %v927_v39 = vmax.f32 %v925_v36, 0.0 }
 0x229   : > { %v926_v40 = vmax.f32 %v924_v38, 0.0 }
 0x22a   : > { %1034 = vst [vmem:[%s239_s26 + $0x18] sm:$0xff] %v927_v39 }
 0x22b   : > { %1033 = vst [vmem:[%s239_s26 + $0x10] sm:$0xff] %v926_v40 }
 0x22c PF: > { %s16_s18 = sadd.s32 1, %s1582_s18  }
 0x22d   : > { %p13_p3 = scmp.ge.s32.totalorder %s16_s18, 4  }
 0x22f   :  { %15 = sbr.rel (!%p13_p3) target bundleno = 1 (0x1), region = 81 }
 0x236   :  { %952 = vsyncpa [#allocation5], 1 }
 0x237   :  { %954 = vsyncpa [#allocation5 + $0x1], 1 }

</bundles_post_ra>
